<compile_context>
chip_gen: v7x
topology: tpu7x:2x2x1
jax: 0.10.0
libtpu: 0.0.40
codegen_flags: <defaults>
</compile_context>

<pallas_src>
import functools
import math

import jax
import jax.numpy as jnp
from jax.experimental import pallas as pl
from jax.experimental.pallas import tpu as pltpu


def _mhsa_kernel(hid_ref, watt_ref, batt_ref, wqkv_ref, bqkv_ref,
                 wo_ref, bo_ref, out_ref, *, h, d_k):
    """One grid step = B_BLK batch elements. All projections + attention fused."""
    f32 = jnp.float32
    bf16 = jnp.bfloat16
    B, nq, D = hid_ref.shape
    hdk = h * d_k
    scale = 1.0 / math.sqrt(d_k)

    # Flatten the batch block into a tall slab for the projection matmuls.
    x = hid_ref[...].reshape(B * nq, D).astype(bf16)

    # decoder_att: (B*nq, D) @ (D, A) + (1, A)
    queries = jnp.dot(x, watt_ref[...], preferred_element_type=f32) + batt_ref[...]

    # Fused q|k|v projection: (B*nq, A) @ (A, 3*h*d_k) + (1, 3*h*d_k)
    qkv = jnp.dot(queries.astype(bf16), wqkv_ref[...],
                  preferred_element_type=f32) + bqkv_ref[...]
    qkv = qkv.reshape(B, nq, 3 * hdk).astype(bf16)

    # fc_o decomposed per head: concat_h(o_h) @ W_o == sum_h o_h @ W_o[h].
    acc = jnp.zeros((B * nq, D), f32)
    for hh in range(h):                       # h is small & static -> unrolled
        q_h = qkv[:, :, hh * d_k:(hh + 1) * d_k]                    # (B, nq, d_k)
        k_h = qkv[:, :, hdk + hh * d_k:hdk + (hh + 1) * d_k]
        v_h = qkv[:, :, 2 * hdk + hh * d_k:2 * hdk + (hh + 1) * d_k]

        # Scores: contract last dims directly (no K transpose), batched over B.
        s = jnp.einsum('bqd,bkd->bqk', q_h, k_h,
                       preferred_element_type=f32) * scale          # (B, nq, nq)
        s = s - jnp.max(s, axis=-1, keepdims=True)
        e = jnp.exp(s)
        inv = pl.reciprocal(jnp.sum(e, axis=-1, keepdims=True), approx=True)
        p = (e * inv).astype(bf16)                                   # softmax

        o_h = jnp.einsum('bqk,bkd->bqd', p, v_h,
                         preferred_element_type=f32)                 # (B, nq, d_k)
        acc = acc + jnp.dot(o_h.reshape(B * nq, d_k).astype(bf16),
                            wo_ref[hh], preferred_element_type=f32)

    out = acc + bo_ref[...]
    out_ref[...] = out.reshape(B, nq, D).astype(out_ref.dtype)


def _pick_batch_block(b_s, target=8):
    """Largest divisor of b_s <= target; prefer keeping >= 2 grid steps (v7x: 2 TCs)."""
    divs = [d for d in range(1, b_s + 1) if b_s % d == 0]
    cands = [d for d in divs if d <= target and b_s // d >= 2]
    if not cands:
        cands = [d for d in divs if d <= target] or [1]
    return max(cands)


def mhsa_forward(hidden, params, *, h, d_k):
    b_s, nq, dim, d_state = hidden.shape
    D = dim * d_state
    hdk = h * d_k
    x = hidden.reshape(b_s, nq, D)

    bf16 = jnp.bfloat16
    # Pack / pre-cast weights once in the wrapper (bf16 MXU inputs; f32 biases).
    w_att = params["w_att"].astype(bf16)                               # (D, A)
    w_qkv = jnp.concatenate([params["w_q"], params["w_k"], params["w_v"]],
                            axis=1).astype(bf16)                       # (A, 3*hdk)
    b_qkv = jnp.concatenate([params["b_q"], params["b_k"], params["b_v"]],
                            axis=1)                                    # (1, 3*hdk)
    w_o_heads = params["w_o"].reshape(h, d_k, D).astype(bf16)          # (h, d_k, D)

    b_blk = _pick_batch_block(b_s)
    grid = (b_s // b_blk,)

    kernel = functools.partial(_mhsa_kernel, h=h, d_k=d_k)

    def full_spec(shape):
        n = len(shape)
        return pl.BlockSpec(shape, lambda b, _n=n: (0,) * _n)

    out = pl.pallas_call(
        kernel,
        out_shape=jax.ShapeDtypeStruct((b_s, nq, D), hidden.dtype),
        grid=grid,
        in_specs=[
            pl.BlockSpec((b_blk, nq, D), lambda b: (b, 0, 0)),
            full_spec(w_att.shape), full_spec(params["b_att"].shape),
            full_spec(w_qkv.shape), full_spec(b_qkv.shape),
            full_spec(w_o_heads.shape), full_spec(params["b_o"].shape),
        ],
        out_specs=pl.BlockSpec((b_blk, nq, D), lambda b: (b, 0, 0)),
        compiler_params=pltpu.CompilerParams(dimension_semantics=("parallel",)),
    )(x, w_att, params["b_att"], w_qkv, b_qkv, w_o_heads, params["b_o"])

    return out.reshape(b_s, nq, dim, d_state)


def mhsa_reference(hidden, params, *, h, d_k):
    """Pure-JAX (f32) mirror of the PyTorch forward, for correctness check."""
    b_s, nq, dim, d_state = hidden.shape
    x = hidden.reshape(b_s, nq, -1)
    queries = x @ params["w_att"] + params["b_att"]
    q = (queries @ params["w_q"] + params["b_q"]).reshape(b_s, nq, h, d_k).transpose(0, 2, 1, 3)
    k = (queries @ params["w_k"] + params["b_k"]).reshape(b_s, nq, h, d_k).transpose(0, 2, 3, 1)
    v = (queries @ params["w_v"] + params["b_v"]).reshape(b_s, nq, h, d_k).transpose(0, 2, 1, 3)
    att = jnp.matmul(q, k) / math.sqrt(d_k)
    att = jax.nn.softmax(att, axis=-1)
    out = jnp.matmul(att, v).transpose(0, 2, 1, 3).reshape(b_s, nq, h * d_k)
    out = out @ params["w_o"] + params["b_o"]
    return out.reshape(b_s, nq, dim, d_state)


def init_params(key, dim, attention_dim, d_state, h):
    """Deterministic init mirroring the module's __init__ shapes.
    decoder_att uses PyTorch's default uniform init; q/k/v/o use xavier-uniform
    weights with zero bias, matching init_weights()."""
    A = attention_dim // 16
    D = dim * d_state
    d_k = A // h
    keys = jax.random.split(key, 6)

    def xavier(k, fan_in, fan_out):
        bound = math.sqrt(6.0 / (fan_in + fan_out))
        return jax.random.uniform(k, (fan_in, fan_out), jnp.float32, -bound, bound)

    bound_att = 1.0 / math.sqrt(D)
    params = {
        "w_att": jax.random.uniform(keys[0], (D, A), jnp.float32, -bound_att, bound_att),
        "b_att": jax.random.uniform(keys[1], (1, A), jnp.float32, -bound_att, bound_att),
        "w_q": xavier(keys[2], A, h * d_k), "b_q": jnp.zeros((1, h * d_k), jnp.float32),
        "w_k": xavier(keys[3], A, h * d_k), "b_k": jnp.zeros((1, h * d_k), jnp.float32),
        "w_v": xavier(keys[4], A, h * d_k), "b_v": jnp.zeros((1, h * d_k), jnp.float32),
        "w_o": xavier(keys[5], h * d_k, D), "b_o": jnp.zeros((1, D), jnp.float32),
    }
    return params, d_k


if __name__ == "__main__":
    # Small config: dim=4, d_state=8 -> D=32; attention_dim=256 -> A=16; h=2 -> d_k=8
    dim, attention_dim, d_state, h = 4, 256, 8, 2
    b_s, nq = 2, 8

    key = jax.random.PRNGKey(0)
    k_hidden, k_params = jax.random.split(key)
    hidden = jax.random.normal(k_hidden, (b_s, nq, dim, d_state), jnp.float32)
    params, d_k = init_params(k_params, dim, attention_dim, d_state, h)

    out = mhsa_forward(hidden, params, h=h, d_k=d_k)
    out = jax.block_until_ready(out)

    ref = mhsa_reference(hidden, params, h=h, d_k=d_k)
    assert out.shape == (b_s, nq, dim, d_state), out.shape
    # Tolerance loosened for bf16 MXU inputs (f32 accumulation).
    assert jnp.allclose(out, ref, atol=5e-2, rtol=5e-2), float(jnp.abs(out - ref).max())

    print("KERNEL_OK")
</pallas_src>

<mosaic_0001>
module attributes {stable_mosaic.version = 11 : i64} {
  func.func @_mhsa_kernel(%arg0: i32, %arg1: memref<1x8x32xf32, #tpu.memory_space<vmem>>, %arg2: memref<32x16xbf16, #tpu.memory_space<vmem>>, %arg3: memref<1x16xf32, #tpu.memory_space<vmem>>, %arg4: memref<16x48xbf16, #tpu.memory_space<vmem>>, %arg5: memref<1x48xf32, #tpu.memory_space<vmem>>, %arg6: memref<2x8x32xbf16, #tpu.memory_space<vmem>>, %arg7: memref<1x32xf32, #tpu.memory_space<vmem>>, %arg8: memref<1x8x32xf32, #tpu.memory_space<vmem>>) attributes {dimension_semantics = [#tpu.dimension_semantics<parallel>], iteration_bounds = array<i64: 2>, scalar_prefetch = 0 : i64, scratch_operands = 0 : i64, tpu.core_type = #tpu.core_type<tc>, window_params = [{transform_indices = @transform_0, window_bounds = array<i64: 1, 8, 32>}, {pipeline_mode = #tpu.pipeline_mode<synchronous>, transform_indices = @transform_1, window_bounds = array<i64: 32, 16>}, {pipeline_mode = #tpu.pipeline_mode<synchronous>, transform_indices = @transform_2, window_bounds = array<i64: 1, 16>}, {pipeline_mode = #tpu.pipeline_mode<synchronous>, transform_indices = @transform_3, window_bounds = array<i64: 16, 48>}, {pipeline_mode = #tpu.pipeline_mode<synchronous>, transform_indices = @transform_4, window_bounds = array<i64: 1, 48>}, {pipeline_mode = #tpu.pipeline_mode<synchronous>, transform_indices = @transform_5, window_bounds = array<i64: 2, 8, 32>}, {pipeline_mode = #tpu.pipeline_mode<synchronous>, transform_indices = @transform_6, window_bounds = array<i64: 1, 32>}, {transform_indices = @transform_7, window_bounds = array<i64: 1, 8, 32>}]} {
    %c0 = arith.constant 0 : index
    %c0_0 = arith.constant 0 : index
    %c0_1 = arith.constant 0 : index
    %0 = vector.load %arg1[%c0, %c0_0, %c0_1] : memref<1x8x32xf32, #tpu.memory_space<vmem>>, vector<1x8x32xf32>
    %1 = vector.shape_cast %0 : vector<1x8x32xf32> to vector<8x32xf32>
    %2 = arith.truncf %1 : vector<8x32xf32> to vector<8x32xbf16>
    %c0_2 = arith.constant 0 : index
    %c0_3 = arith.constant 0 : index
    %3 = vector.load %arg2[%c0_2, %c0_3] : memref<32x16xbf16, #tpu.memory_space<vmem>>, vector<32x16xbf16>
    %cst = arith.constant dense<0.000000e+00> : vector<8x16xf32>
    %4 = tpu.matmul %2, %3, %cst {dimension_numbers = #tpu.dot_dimension_numbers<[1], [0], [0], [1], [0, 0, 1, 1], [], []>} : vector<8x32xbf16>, vector<32x16xbf16>, vector<8x16xf32> -> vector<8x16xf32>
    %c0_4 = arith.constant 0 : index
    %c0_5 = arith.constant 0 : index
    %5 = vector.load %arg3[%c0_4, %c0_5] : memref<1x16xf32, #tpu.memory_space<vmem>>, vector<1x16xf32>
    %6 = vector.broadcast %5 : vector<1x16xf32> to vector<8x16xf32>
    %7 = arith.addf %4, %6 : vector<8x16xf32>
    %8 = arith.truncf %7 : vector<8x16xf32> to vector<8x16xbf16>
    %c0_6 = arith.constant 0 : index
    %c0_7 = arith.constant 0 : index
    %9 = vector.load %arg4[%c0_6, %c0_7] : memref<16x48xbf16, #tpu.memory_space<vmem>>, vector<16x48xbf16>
    %cst_8 = arith.constant dense<0.000000e+00> : vector<8x48xf32>
    %10 = tpu.matmul %8, %9, %cst_8 {dimension_numbers = #tpu.dot_dimension_numbers<[1], [0], [0], [1], [0, 0, 1, 1], [], []>} : vector<8x16xbf16>, vector<16x48xbf16>, vector<8x48xf32> -> vector<8x48xf32>
    %c0_9 = arith.constant 0 : index
    %c0_10 = arith.constant 0 : index
    %11 = vector.load %arg5[%c0_9, %c0_10] : memref<1x48xf32, #tpu.memory_space<vmem>>, vector<1x48xf32>
    %12 = vector.broadcast %11 : vector<1x48xf32> to vector<8x48xf32>
    %13 = arith.addf %10, %12 : vector<8x48xf32>
    %14 = vector.shape_cast %13 : vector<8x48xf32> to vector<1x8x48xf32>
    %15 = arith.truncf %14 : vector<1x8x48xf32> to vector<1x8x48xbf16>
    %cst_11 = arith.constant 0.000000e+00 : f32
    %16 = vector.broadcast %cst_11 : f32 to vector<8x32xf32>
    %17 = vector.extract_strided_slice %15 {offsets = [0, 0, 0], sizes = [1, 8, 8], strides = [1, 1, 1]} : vector<1x8x48xbf16> to vector<1x8x8xbf16>
    %18 = vector.extract_strided_slice %15 {offsets = [0, 0, 16], sizes = [1, 8, 8], strides = [1, 1, 1]} : vector<1x8x48xbf16> to vector<1x8x8xbf16>
    %19 = vector.extract_strided_slice %15 {offsets = [0, 0, 32], sizes = [1, 8, 8], strides = [1, 1, 1]} : vector<1x8x48xbf16> to vector<1x8x8xbf16>
    "tpu.trace_start"() <{level = 10 : i32, message = "bqd,bkd->bqk"}> : () -> ()
    %cst_12 = arith.constant dense<0.000000e+00> : vector<1x8x8xf32>
    %20 = tpu.matmul %17, %18, %cst_12 {dimension_numbers = #tpu.dot_dimension_numbers<[2], [2], [1], [1], [0, 0, 0, 1, 1, 1], [0], [0]>} : vector<1x8x8xbf16>, vector<1x8x8xbf16>, vector<1x8x8xf32> -> vector<1x8x8xf32>
    "tpu.trace_stop"() : () -> ()
    %cst_13 = arith.constant 0.353553385 : f32
    %21 = vector.broadcast %cst_13 : f32 to vector<1x8x8xf32>
    %22 = arith.mulf %20, %21 : vector<1x8x8xf32>
    %cst_14 = arith.constant dense<0xFF800000> : vector<1x8xf32>
    %23 = vector.multi_reduction <maximumf>, %22, %cst_14 [2] : vector<1x8x8xf32> to vector<1x8xf32>
    %24 = vector.shape_cast %23 : vector<1x8xf32> to vector<1x8x1xf32>
    %25 = vector.broadcast %24 : vector<1x8x1xf32> to vector<1x8x8xf32>
    %26 = arith.subf %22, %25 : vector<1x8x8xf32>
    %27 = math.exp %26 : vector<1x8x8xf32>
    %cst_15 = arith.constant dense<0.000000e+00> : vector<1x8xf32>
    %28 = vector.multi_reduction <add>, %27, %cst_15 [2] : vector<1x8x8xf32> to vector<1x8xf32>
    %29 = vector.shape_cast %28 : vector<1x8xf32> to vector<1x8x1xf32>
    %30 = tpu.reciprocal %29 {approx = true} : vector<1x8x1xf32> -> vector<1x8x1xf32>
    %31 = vector.broadcast %30 : vector<1x8x1xf32> to vector<1x8x8xf32>
    %32 = arith.mulf %27, %31 : vector<1x8x8xf32>
    %33 = arith.truncf %32 : vector<1x8x8xf32> to vector<1x8x8xbf16>
    "tpu.trace_start"() <{level = 10 : i32, message = "bqk,bkd->bqd"}> : () -> ()
    %cst_16 = arith.constant dense<0.000000e+00> : vector<1x8x8xf32>
    %34 = tpu.matmul %33, %19, %cst_16 {dimension_numbers = #tpu.dot_dimension_numbers<[2], [1], [1], [2], [0, 0, 0, 1, 1, 2], [0], [0]>} : vector<1x8x8xbf16>, vector<1x8x8xbf16>, vector<1x8x8xf32> -> vector<1x8x8xf32>
    "tpu.trace_stop"() : () -> ()
    %35 = vector.shape_cast %34 : vector<1x8x8xf32> to vector<8x8xf32>
    %36 = arith.truncf %35 : vector<8x8xf32> to vector<8x8xbf16>
    %c0_17 = arith.constant 0 : index
    %c0_18 = arith.constant 0 : index
    %c0_19 = arith.constant 0 : index
    %37 = vector.load %arg6[%c0_17, %c0_18, %c0_19] : memref<2x8x32xbf16, #tpu.memory_space<vmem>>, vector<1x8x32xbf16>
    %38 = vector.shape_cast %37 : vector<1x8x32xbf16> to vector<8x32xbf16>
    %cst_20 = arith.constant dense<0.000000e+00> : vector<8x32xf32>
    %39 = tpu.matmul %36, %38, %cst_20 {dimension_numbers = #tpu.dot_dimension_numbers<[1], [0], [0], [1], [0, 0, 1, 1], [], []>} : vector<8x8xbf16>, vector<8x32xbf16>, vector<8x32xf32> -> vector<8x32xf32>
    %40 = arith.addf %16, %39 : vector<8x32xf32>
    %41 = vector.extract_strided_slice %15 {offsets = [0, 0, 8], sizes = [1, 8, 8], strides = [1, 1, 1]} : vector<1x8x48xbf16> to vector<1x8x8xbf16>
    %42 = vector.extract_strided_slice %15 {offsets = [0, 0, 24], sizes = [1, 8, 8], strides = [1, 1, 1]} : vector<1x8x48xbf16> to vector<1x8x8xbf16>
    %43 = vector.extract_strided_slice %15 {offsets = [0, 0, 40], sizes = [1, 8, 8], strides = [1, 1, 1]} : vector<1x8x48xbf16> to vector<1x8x8xbf16>
    "tpu.trace_start"() <{level = 10 : i32, message = "bqd,bkd->bqk"}> : () -> ()
    %cst_21 = arith.constant dense<0.000000e+00> : vector<1x8x8xf32>
    %44 = tpu.matmul %41, %42, %cst_21 {dimension_numbers = #tpu.dot_dimension_numbers<[2], [2], [1], [1], [0, 0, 0, 1, 1, 1], [0], [0]>} : vector<1x8x8xbf16>, vector<1x8x8xbf16>, vector<1x8x8xf32> -> vector<1x8x8xf32>
    "tpu.trace_stop"() : () -> ()
    %cst_22 = arith.constant 0.353553385 : f32
    %45 = vector.broadcast %cst_22 : f32 to vector<1x8x8xf32>
    %46 = arith.mulf %44, %45 : vector<1x8x8xf32>
    %cst_23 = arith.constant dense<0xFF800000> : vector<1x8xf32>
    %47 = vector.multi_reduction <maximumf>, %46, %cst_23 [2] : vector<1x8x8xf32> to vector<1x8xf32>
    %48 = vector.shape_cast %47 : vector<1x8xf32> to vector<1x8x1xf32>
    %49 = vector.broadcast %48 : vector<1x8x1xf32> to vector<1x8x8xf32>
    %50 = arith.subf %46, %49 : vector<1x8x8xf32>
    %51 = math.exp %50 : vector<1x8x8xf32>
    %cst_24 = arith.constant dense<0.000000e+00> : vector<1x8xf32>
    %52 = vector.multi_reduction <add>, %51, %cst_24 [2] : vector<1x8x8xf32> to vector<1x8xf32>
    %53 = vector.shape_cast %52 : vector<1x8xf32> to vector<1x8x1xf32>
    %54 = tpu.reciprocal %53 {approx = true} : vector<1x8x1xf32> -> vector<1x8x1xf32>
    %55 = vector.broadcast %54 : vector<1x8x1xf32> to vector<1x8x8xf32>
    %56 = arith.mulf %51, %55 : vector<1x8x8xf32>
    %57 = arith.truncf %56 : vector<1x8x8xf32> to vector<1x8x8xbf16>
    "tpu.trace_start"() <{level = 10 : i32, message = "bqk,bkd->bqd"}> : () -> ()
    %cst_25 = arith.constant dense<0.000000e+00> : vector<1x8x8xf32>
    %58 = tpu.matmul %57, %43, %cst_25 {dimension_numbers = #tpu.dot_dimension_numbers<[2], [1], [1], [2], [0, 0, 0, 1, 1, 2], [0], [0]>} : vector<1x8x8xbf16>, vector<1x8x8xbf16>, vector<1x8x8xf32> -> vector<1x8x8xf32>
    "tpu.trace_stop"() : () -> ()
    %59 = vector.shape_cast %58 : vector<1x8x8xf32> to vector<8x8xf32>
    %60 = arith.truncf %59 : vector<8x8xf32> to vector<8x8xbf16>
    %c1 = arith.constant 1 : index
    %c0_26 = arith.constant 0 : index
    %c0_27 = arith.constant 0 : index
    %61 = vector.load %arg6[%c1, %c0_26, %c0_27] : memref<2x8x32xbf16, #tpu.memory_space<vmem>>, vector<1x8x32xbf16>
    %62 = vector.shape_cast %61 : vector<1x8x32xbf16> to vector<8x32xbf16>
    %cst_28 = arith.constant dense<0.000000e+00> : vector<8x32xf32>
    %63 = tpu.matmul %60, %62, %cst_28 {dimension_numbers = #tpu.dot_dimension_numbers<[1], [0], [0], [1], [0, 0, 1, 1], [], []>} : vector<8x8xbf16>, vector<8x32xbf16>, vector<8x32xf32> -> vector<8x32xf32>
    %64 = arith.addf %40, %63 : vector<8x32xf32>
    %c0_29 = arith.constant 0 : index
    %c0_30 = arith.constant 0 : index
    %65 = vector.load %arg7[%c0_29, %c0_30] : memref<1x32xf32, #tpu.memory_space<vmem>>, vector<1x32xf32>
    %66 = vector.broadcast %65 : vector<1x32xf32> to vector<8x32xf32>
    %67 = arith.addf %64, %66 : vector<8x32xf32>
    %68 = vector.shape_cast %67 : vector<8x32xf32> to vector<1x8x32xf32>
    %c0_31 = arith.constant 0 : index
    %c0_32 = arith.constant 0 : index
    %c0_33 = arith.constant 0 : index
    %69 = vector.load %arg8[%c0_31, %c0_32, %c0_33] : memref<1x8x32xf32, #tpu.memory_space<vmem>>, vector<1x8x32xf32>
    tpu.vector_store %arg8[%c0_31, %c0_32, %c0_33], %68 {strides = array<i32>} : memref<1x8x32xf32, #tpu.memory_space<vmem>>, vector<1x8x32xf32>,
    return
  }
  func.func @transform_0(%arg0: i32) -> (i32, i32, i32) {
    %c0_i32 = arith.constant 0 : i32
    %c0_i32_0 = arith.constant 0 : i32
    %c0_i32_1 = arith.constant 0 : i32
    return %arg0, %c0_i32, %c0_i32_0 : i32, i32, i32
  }
  func.func @transform_1(%arg0: i32) -> (i32, i32) {
    %c0_i32 = arith.constant 0 : i32
    %c0_i32_0 = arith.constant 0 : i32
    %c0_i32_1 = arith.constant 0 : i32
    return %c0_i32, %c0_i32_0 : i32, i32
  }
  func.func @transform_2(%arg0: i32) -> (i32, i32) {
    %c0_i32 = arith.constant 0 : i32
    %c0_i32_0 = arith.constant 0 : i32
    %c0_i32_1 = arith.constant 0 : i32
    return %c0_i32, %c0_i32_0 : i32, i32
  }
  func.func @transform_3(%arg0: i32) -> (i32, i32) {
    %c0_i32 = arith.constant 0 : i32
    %c0_i32_0 = arith.constant 0 : i32
    %c0_i32_1 = arith.constant 0 : i32
    return %c0_i32, %c0_i32_0 : i32, i32
  }
  func.func @transform_4(%arg0: i32) -> (i32, i32) {
    %c0_i32 = arith.constant 0 : i32
    %c0_i32_0 = arith.constant 0 : i32
    %c0_i32_1 = arith.constant 0 : i32
    return %c0_i32, %c0_i32_0 : i32, i32
  }
  func.func @transform_5(%arg0: i32) -> (i32, i32, i32) {
    %c0_i32 = arith.constant 0 : i32
    %c0_i32_0 = arith.constant 0 : i32
    %c0_i32_1 = arith.constant 0 : i32
    %c0_i32_2 = arith.constant 0 : i32
    return %c0_i32, %c0_i32_0, %c0_i32_1 : i32, i32, i32
  }
  func.func @transform_6(%arg0: i32) -> (i32, i32) {
    %c0_i32 = arith.constant 0 : i32
    %c0_i32_0 = arith.constant 0 : i32
    %c0_i32_1 = arith.constant 0 : i32
    return %c0_i32, %c0_i32_0 : i32, i32
  }
  func.func @transform_7(%arg0: i32) -> (i32, i32, i32) {
    %c0_i32 = arith.constant 0 : i32
    %c0_i32_0 = arith.constant 0 : i32
    %c0_i32_1 = arith.constant 0 : i32
    return %arg0, %c0_i32, %c0_i32_0 : i32, i32, i32
  }
}

</mosaic_0001>

<bundles_post_ra>
// kernel: tpu_custom_call.1
= control target key start
LH: loop header
LB: loop body
LE: loop exit
PB: predicated region body
PF: predicated region fallthrough
CT: control target
= control target key end

     0   :  { %12 = vsyncpa [#allocation3], 0  ;;  %s1235_s0 = inlined_call_operand.vmem [shape: f32[2,8,32], index: 0, kind: input, shape index: {}]   ;;  %s1236_s1 = inlined_call_operand.vmem [shape: bf16[32,16], index: 1, kind: input, shape index: {}]   ;;  %s1237_s2 = inlined_call_operand.vmem [shape: f32[1,16], index: 2, kind: input, shape index: {}]   ;;  %s1238_s3 = inlined_call_operand.vmem [shape: bf16[16,48], index: 3, kind: input, shape index: {}]   ;;  %s1239_s4 = inlined_call_operand.vmem [shape: f32[1,48], index: 4, kind: input, shape index: {}]   ;;  %s1240_s5 = inlined_call_operand.vmem [shape: bf16[2,8,32], index: 5, kind: input, shape index: {}]   ;;  %s1241_s6 = inlined_call_operand.vmem [shape: f32[1,32], index: 6, kind: input, shape index: {}]   ;;  %s1242_s7 = inlined_call_operand.hbm [shape: f32[2,8,32], index: 7, kind: output, shape index: {}]  }
   0x1   :  { %14 = vsyncpa [#allocation3 + $0x1], 0  ;;  %s1068_s24 = smov 0   ;;  %s1070_s25 = smov 0  }
   0x2   :  { %s1072_s26 = smov 0   ;;  %s1074_s27 = smov 0  }
   0x3 LB: > { %s1089_s28 = sadd.s32 4294967295, %s1018_s27   ;;  %s807_s29 = sadd.s32 4294967294, %s1018_s27   ;;  %s1018_s27 = sphi %s1074_s27, %s1248_s27   ;;  %s1014_s26 = sphi %s1072_s26, %s1247_s26   ;;  %s1010_s25 = sphi %s1070_s25, %s1246_s25   ;;  %s1006_s24 = sphi %s1068_s24, %s1245_s24  }
   0x4   : > { %s1093_s30 = sadd.s32 1, %s1018_s27   ;;  %s179_s8 = sadd.s32 1, %s1014_s26 }
   0x5   : > { %s176_s9 = ssub.s32 %s1018_s27, %s1093_s30  ;;  %p189_p0 = scmp.ne.s32.totalorder %s1014_s26, %s1010_s25 }
   0x6   : > { %p177_p1 = scmp.eq.s32.totalorder %s176_s9, 0  ;;  %p190_p2 = scmp.eq.s32.totalorder %s1089_s28, 1 }
   0x7   : > { %p195_p3 = scmp.ne.s32.totalorder %s1010_s25, %s1006_s24  ;;  %p196_p4 = scmp.eq.s32.totalorder %s807_s29, 1 }
   0x8   : > { %s1104_s10 = scalar_select %p177_p1, %s1014_s26, %s179_s8  }
   0x9   : > { %p1106_p5 = por %p190_p2, %p189_p0  ;;  %p1110_p6 = por %p196_p4, %p195_p3 }
   0xa   : > { %p810_p7 = scmp.ge.s32.totalorder %s1018_s27, 1  ;;  %p239_p8 = scmp.lt.s32.totalorder %s1018_s27, 3 }
   0xc   : > { %p240_p9 = pnand %p810_p7, %p239_p8 }
   0xd   : > { %v945_v0 = vld [vmem:[%s1236_s1] sm:$0xff] (!%p240_p9)   ;;  %v1020_v1 = vmov (!%p240_p9), 0.0   ;;  %v946_v2 = vld [vmem:[%s1236_s1 + $0x8] sm:$0xff] (!%p240_p9)   ;;  %vm1021_vm0 = vmmov (!%p240_p9), 0   ;;  %p270_p10 = scmp.lt.s32.totalorder (!%p240_p9), %s1089_s28, 1  ;;  %vm300_vm1 = vcmask (!%p240_p9), 261120  }
   0xe   : > { %243 = sbr.rel (%p240_p9) target bundleno = 1565 (0x61d), region = 48  ;;  %849 = vmatprep.subr.bf16.mxu0 (!%p240_p9), %v1020_v1  ;;  %857 = vmatprep.subr.bf16.mxu1 (!%p240_p9), %v1020_v1  ;;  %v947_v5 = vld [vmem:[%s1238_s3] sm:$0xff] (!%p240_p9)   ;;  %vm360_vm2 = vcmask (!%p240_p9), 130048   ;;  %s1022_s14 = smov (!%p240_p9), 120   ;;  %vm408_vm3 = vcmask (!%p240_p9), 64512   ;;  %vm473_vm4 = vcmask (!%p240_p9), 1043456  }
   0xf   : > { %850 = vmatpush3.bf16.msra.mxu0 (!%p240_p9), %v945_v0  ;;  %853 = vmatprep.mubr.msk.bf16.mxu0 (!%p240_p9), %vm1021_vm0, %v1020_v1  ;;  %v813_v6 = vld [vmem:[%s1237_s2] ss:$0 sm:$0xff] (!%p240_p9)  ;;  %s1023_s15 = smov (!%p240_p9), 112   ;;  %s1024_s16 = smov (!%p240_p9), 104   ;;  %v824_v61 = vld [vmem:[%s1240_s5 + $0x4] sm:$0xf] (!%p240_p9) }
  0x10   : > { %851 = vmatprep.subr.bf16.mxu0 (!%p240_p9), %v1020_v1  ;;  %859 = vmatprep.mubr.msk.bf16.mxu1 (!%p240_p9), %vm1021_vm0, %v1020_v1  ;;  %v817_v13 = vld [vmem:[%s1239_s4] ss:$0 sm:$0xff] (!%p240_p9)  ;;  %v637_v62 = vsel (!%p240_p9), %vm473_vm4, %v824_v61, 0  ;;  %s267_s23 = sand.u32 (!%p240_p9), 1, %s1010_s25   ;;  %s829_s13 = sshll.u32 (!%p240_p9), %s1089_s28, 7 }
  0x11   : > { %858 = vmatpush3.bf16.msra.mxu1 (!%p240_p9), %v947_v5  ;;  %v518_v59 = vld [vmem:[%s1240_s5] sm:$0xf] (!%p240_p9)  ;;  %s811_s29 = sshll.u32 (!%p240_p9), %s267_s23, 3  ;;  %s1027_s20 = smov (!%p240_p9), [#allocation2]  }
  0x12   : > { %863 = vmatprep.subr.bf16.mxu1 (!%p240_p9), %v1020_v1  ;;  %v683_v60 = vsel (!%p240_p9), %vm473_vm4, %v518_v59, 0 }
  0x13   : > { %852 = vmatpush3.bf16.msra.mxu0 (!%p240_p9), %v946_v2 }
  0x14   : > { %869 = vmatprep.subr.bf16.mxu0 (!%p240_p9), %v1020_v1 }
  0x15   : > { %s271_s17 = scalar_select %p270_p10, %s1089_s28, 1 }
  0x16   : > { %s735_s28 = scalar_lea.sflag [#allocation3], %s267_s23 }
  0x17   : > { %s812_s18 = sshll.u32 %s271_s17, 3  ;;  %s1025_s17 = smov 96  }
  0x18   : > { %s273_s21 = scalar_lea.vmem %s1235_s0, %s812_s18  ;;  %s1026_s18 = smov 88  }
  0x19   : > { %v275_v3 = vld [vmem:[%s273_s21] sm:$0xff]  ;;  %s960_s21 = sshll.u32 %s1027_s20, 4  ;;  %s961_s21 = int_to_ptr.vmem [resolvable:$false] %s960_s21 }
  0x1a   : > { %v276_v4 = vpack.c.bf16 %v275_v3, %v275_v3  ;;  %s962_s22 = scalar_lea.vmem %s961_s21, 256 }
  0x1c   : > { %854 = vmatmul.mubr.msk.bf16.vlgmr.msra.gmra.mrb[0].mxu0 %vm300_vm1, %v276_v4 }
  0x1d   : > { %871 = vmatprep.mubr.msk.bf16.mxu0 %vm1021_vm0, %v1020_v1 }
  0xef   : > { %v338_v7 = vpop.f32.mrb[0].mxu0 }
  0xf0   : > { %v339_v8 = vadd.f32 %v813_v6, %v338_v7  ;;  %v855_v9 = vpop.f32.mrb[1].mxu0 }
  0xf1   : > { %v341_v10 = vpop.f32.mrb[2].mxu0 }
  0xf2   : > { %v344_v11 = vpack.c.bf16 %v339_v8, %v339_v8  ;;  %v856_v12 = vpop.f32.mrb[3].mxu0 }
  0xf4   : > { %860 = vmatmul.mubr.msk.bf16.vlgmr.msra.gmra.mrb[0].mxu1 %vm360_vm2, %v344_v11 }
  0xf5   : > { %865 = vmatprep.mubr.msk.bf16.mxu1 %vm1021_vm0, %v1020_v1 }
 0x1c7   : > { %v398_v14 = vpop.f32.mrb[0].mxu1 }
 0x1c8   : > { %v399_v15 = vadd.f32 %v817_v13, %v398_v14  ;;  %v861_v16 = vpop.f32.mrb[1].mxu1  ;;  %v827_v14 = vld [vmem:[%s1241_s6] ss:$0 sm:$0xff] }
 0x1c9   : > { %v401_v17 = vpop.f32.mrb[2].mxu1 }
 0x1ca   : > { %v404_v18 = vpack.c.bf16 %v399_v15, %v399_v15  ;;  %v862_v19 = vpop.f32.mrb[3].mxu1 }
 0x1cc   : > { %519 = vrot.lane.b32.xlu1 %v404_v18, %s1022_s14  ;;  %406 = vrot.lane.b32.xlu0 %v404_v18, %s1023_s15  ;;  %s269_s14 = scalar_lea.vmem [#allocation2], %s811_s29 }
 0x1cd   : > { %s748_s15 = sshll.u32 %s269_s14, 4  ;;  %s1194_s15 = int_to_ptr.vmem [resolvable:$true] %s748_s15 }
 0x1ce   : > { %s956_s19 = scalar_lea.vmem %s1194_s15, 128  ;;  %p963_p0 = scmp.lt.s32.totalorder %s1194_s15, %s961_s21 }
 0x1cf   : > { %p957_p11 = scmp.ne.s32.totalorder %s1194_s15, %s956_s19  ;;  %p964_p1 = scmp.lt.s32.totalorder %s962_s22, %s956_s19 }
 0x1d0   : > { %521 = vrot.lane.b32.xlu0 %v404_v18, %s1024_s16 }
 0x1d1   : > { %p958_p12 = pnand %p957_p11, %p1106_p5  ;;  %p965_p2 = por %p964_p1, %p963_p0 }
 0x1d3   : > { %p959_p13 = pneg %p958_p12 }
 0x1d5   : > { %p966_p3 = pnand %p965_p2, %p959_p13 }
 0x23e   : > { %v407_v20 = vpop.permute.xlu0 %406  ;;  %v520_v24 = vpop.permute.xlu1 %519 }
 0x23f   : > { %v413_v21 = vsel %vm408_vm3, %v407_v20, 0 }
 0x240   : > { %864 = vmatpush3.bf16.xpose.msra.mxu1 %v413_v21 }
 0x241   : > { %875 = vmatprep.subr.bf16.mxu1 %v1020_v1 }
 0x242   : > { %v522_v22 = vpop.permute.xlu0 %521 }
 0x243   : > { %v527_v23 = vsel %vm408_vm3, %v522_v22, 0 }
 0x247   : > { %866 = vmatmul.mubr.msk.bf16.vlgmr.msra.gmra.mrb[4].mxu1 %vm408_vm3, %v404_v18 }
 0x248   : > { %876 = vmatpush3.bf16.xpose.msra.mxu1 %v527_v23  ;;  %877 = vmatprep.mubr.msk.bf16.mxu1 %vm1021_vm0, %v1020_v1 }
 0x249   : > { %887 = vmatprep.subr.bf16.mxu1 %v1020_v1 }
 0x24f   : > { %878 = vmatmul.mubr.msk.bf16.vlgmr.msra.gmra.mrb[8].mxu1 %vm408_vm3, %v520_v24 }
 0x250   : > { %889 = vmatprep.mubr.msk.bf16.mxu1 %vm1021_vm0, %v1020_v1  ;;  %888 = vmatpush3.bf16.msra.mxu1 %v637_v62 }
 0x31a   : > { %v449_v25 = vpop.f32.mrb[4].mxu1 }
 0x31b   : > { %v455_v26 = vmul.f32 0.35355338, %v449_v25  ;;  %v867_v27 = vpop.f32.mrb[5].mxu1 }
 0x31c   : > { %v452_v28 = vpop.f32.mrb[6].mxu1 }
 0x31d   : > { %v868_v29 = vpop.f32.mrb[7].mxu1  ;;  %v456_v30 = vsel %vm408_vm3, %v455_v26, -inf }
 0x31e   : > { %457 = vmax.xlane.f32.xlu1 %v456_v30 }
 0x322   : > { %v563_v31 = vpop.f32.mrb[8].mxu1 }
 0x323   : > { %v569_v32 = vmul.f32 0.35355338, %v563_v31  ;;  %v879_v33 = vpop.f32.mrb[9].mxu1 }
 0x324   : > { %v566_v34 = vpop.f32.mrb[10].mxu1 }
 0x325   : > { %v880_v35 = vpop.f32.mrb[11].mxu1  ;;  %v570_v36 = vsel %vm408_vm3, %v569_v32, -inf }
 0x326   : > { %571 = vmax.xlane.f32.xlu0 %v570_v36 }
 0x3ab   : > { %v458_v37 = vpop.xlane.xlu1 %457 }
 0x3ac   : > { %v459_v38 = vsub.f32 %v455_v26, %v458_v37 }
 0x3ae   : > { %v460_v39 = vmul.f32 1.442695, %v459_v38 }
 0x3b0   : > { %948 = vpow2.f32 %v460_v39 }
 0x3b3   : > { %v572_v40 = vpop.xlane.xlu0 %571 }
 0x3b4   : > { %v573_v41 = vsub.f32 %v569_v32, %v572_v40 }
 0x3b6   : > { %v574_v42 = vmul.f32 1.442695, %v573_v41 }
 0x3b8   : > { %950 = vpow2.f32 %v574_v42 }
 0x3ba   : > { %v949_v43 = vpop.eup %948 }
 0x3bb   : > { %v462_v44 = vsel %vm408_vm3, %v949_v43, 0.0 }
 0x3bc   : > { %463 = vadd.xlane.f32.xlu0 %v462_v44 }
 0x3c2   : > { %v951_v45 = vpop.eup %950 }
 0x3c3   : > { %v576_v46 = vsel %vm408_vm3, %v951_v45, 0.0 }
 0x3c4   : > { %577 = vadd.xlane.f32.xlu1 %v576_v46 }
 0x3d2   : > { %468 = vrot.lane.b32.xlu0 %v404_v18, %s1025_s17 }
 0x3d5   : > { %582 = vrot.lane.b32.xlu1 %v404_v18, %s1026_s18  ;;  %s1192_s18 = scalar_lea.hbm %s1242_s7, %s829_s13 }
 0x449   : > { %v464_v47 = vpop.xlane.xlu0 %463 }
 0x44a   : > { %952 = vrcp.f32 %v464_v47 }
 0x44d   : > { %v469_v48 = vpop.permute.xlu0 %468 }
 0x44e   : > { %v475_v49 = vsel %vm473_vm4, %v469_v48, 0 }
 0x44f   : > { %870 = vmatpush3.bf16.msra.mxu0 %v475_v49 }
 0x450   : > { %881 = vmatprep.subr.bf16.mxu0 %v1020_v1 }
 0x451   : > { %v578_v50 = vpop.xlane.xlu1 %577 }
 0x452   : > { %954 = vrcp.f32 %v578_v50 }
 0x454   : > { %v953_v51 = vpop.eup %952 }
 0x455   : > { %v466_v52 = vmul.f32 %v953_v51, %v949_v43  ;;  %v583_v53 = vpop.permute.xlu1 %582 }
 0x456   : > { %v588_v55 = vsel %vm473_vm4, %v583_v53, 0 }
 0x457   : > { %v467_v54 = vpack.c.bf16 %v466_v52, %v466_v52 }
 0x459   : > { %872 = vmatmul.mubr.msk.bf16.vlgmr.msra.gmra.mrb[4].mxu0 %vm408_vm3, %v467_v54 }
 0x45a   : > { %882 = vmatpush3.bf16.msra.mxu0 %v588_v55  ;;  %883 = vmatprep.mubr.msk.bf16.mxu0 %vm1021_vm0, %v1020_v1 }
 0x45b   : > { %893 = vmatprep.subr.bf16.mxu0 %v1020_v1 }
 0x45c   : > { %v955_v56 = vpop.eup %954 }
 0x45d   : > { %v580_v57 = vmul.f32 %v955_v56, %v951_v45 }
 0x45f   : > { %v581_v58 = vpack.c.bf16 %v580_v57, %v580_v57 }
 0x461   : > { %884 = vmatmul.mubr.msk.bf16.vlgmr.msra.gmra.mrb[8].mxu0 %vm408_vm3, %v581_v58 }
 0x462   : > { %895 = vmatprep.mubr.msk.bf16.mxu0 %vm1021_vm0, %v1020_v1  ;;  %894 = vmatpush3.bf16.msra.mxu0 %v683_v60 }
 0x52c   : > { %v511_v63 = vpop.f32.mrb[4].mxu0 }
 0x52d   : > { %v517_v0 = vpack.c.bf16 %v511_v63, %v511_v63  ;;  %v873_v2 = vpop.f32.mrb[5].mxu0 }
 0x52e   : > { %v514_v3 = vpop.f32.mrb[6].mxu0 }
 0x52f   : > { %v874_v1 = vpop.f32.mrb[7].mxu0  ;;  %896 = vmatmul.mubr.msk.bf16.vlgmr.msra.gmra.mrb[12].mxu0 %vm408_vm3, %v517_v0 }
 0x534   : > { %v624_v4 = vpop.f32.mrb[8].mxu0 }
 0x535   : > { %v630_v5 = vpack.c.bf16 %v624_v4, %v624_v4  ;;  %v885_v6 = vpop.f32.mrb[9].mxu0 }
 0x536   : > { %v627_v7 = vpop.f32.mrb[10].mxu0 }
 0x537   : > { %v886_v8 = vpop.f32.mrb[11].mxu0  ;;  %890 = vmatmul.mubr.msk.bf16.vlgmr.msra.gmra.mrb[12].mxu1 %vm408_vm3, %v630_v5 }
 0x602   : > { %v719_v9 = vpop.f32.mrb[12].mxu0 }
 0x603   : > { %v897_v10 = vpop.f32.mrb[13].mxu0 }
 0x604   : > { %v722_v11 = vpop.f32.mrb[14].mxu0 }
 0x605   : > { %v898_v12 = vpop.f32.mrb[15].mxu0 }
 0x60a   : > { %v673_v13 = vpop.f32.mrb[12].mxu1 }
 0x60b   : > { %v720_v15 = vadd.f32 %v719_v9, %v673_v13  ;;  %v891_v16 = vpop.f32.mrb[13].mxu1 }
 0x60c   : > { %v676_v17 = vpop.f32.mrb[14].mxu1 }
 0x60d   : > { %v732_v18 = vadd.f32 %v827_v14, %v720_v15  ;;  %v892_v19 = vpop.f32.mrb[15].mxu1 }
 0x60f   : > { %733 = vst.msk [vmem:[%s269_s14] sm:$0xff] %vm300_vm1, %v732_v18 }
 0x610   : > { %969 = shalt.err (!%p966_p3)
}
 0x611   : > { %s970_s23 = scalar_lea.hbm %s1192_s18, 128  ;;  %s974_s9 = scalar_lea.hbm %s1242_s7, 256 }
 0x612   : > { %p971_p4 = scmp.ne.s32.totalorder %s1192_s18, %s970_s23  ;;  %p975_p9 = scmp.lt.u32.totalorder %s1192_s18, %s1242_s7 }
 0x613   : > { %p976_p10 = scmp.lt.u32.totalorder %s974_s9, %s970_s23  ;;  %p978_p12 = scmp.lt.u32.totalorder %s970_s23, %s1192_s18 }
 0x614   : > { %p972_p7 = pnand %p971_p4, %p1106_p5 }
 0x615   : > { %p977_p11 = por %p976_p10, %p975_p9 }
 0x616   : > { %p973_p8 = pneg %p972_p7 }
 0x617   : > { %p979_p13 = por %p978_p12, %p977_p11 }
 0x619   : > { %p980_p0 = pnand %p979_p13, %p973_p8 }
 0x61b   : > { %983 = shalt.err (!%p980_p0)
}
 0x61c   : > { %899 = dma.vmem_to_hbm [thread:$0]  (%p1106_p5), %s1194_s15, 128, %s1192_s18, %s735_s28  }
 0x61d PF: > { %p905_p1 = scmp.ge.s32.totalorder %s1018_s27, 2  ;;  %s760_s16 = sand.u32 1, %s1006_s24  }
 0x61e   : > { %s761_s17 = scalar_lea.sflag [#allocation3], %s760_s16 }
 0x61f   : > { %p902_p2 = pnand %p905_p1, %p1110_p6 }
 0x621   : > { %1001 = dma.done.wait (!%p902_p2), %s761_s17, 128  }
 0x622   : > { %1003 = vsyncadd (!%p902_p2), %s761_s17, 4294967168  ;;  %p17_p3 = scmp.ge.s32.totalorder %s1093_s30, 4   ;;  %s1245_s24 = smov %s1010_s25 }
 0x623   : > { %s1246_s25 = smov %s1014_s26  ;;  %s1247_s26 = smov %s1104_s10 }
 0x624   : > { %s1248_s27 = smov %s1093_s30  ;;  %19 = sbr.rel (!%p17_p3) target bundleno = 3 (0x3), region = 84 }
 0x62b   :  { %766 = vsyncpa [#allocation3], 1 }
 0x62c   :  { %768 = vsyncpa [#allocation3 + $0x1], 1 }

</bundles_post_ra>
